<compile_context>
chip_gen: v6e
topology: v6e:2x2x1
jax: 0.10.0
libtpu: 0.0.40
codegen_flags: <defaults>
</compile_context>

<pallas_src>
import functools

import jax
import jax.numpy as jnp
from jax.experimental import pallas as pl
from jax.experimental.pallas import tpu as pltpu

_LANE = 128      # lane width (last dim)
_SUBLANE = 8     # f32 sublane count (second-to-last dim)


def _round_up(x, m):
    return ((x + m - 1) // m) * m


def _td3_actor2_kernel(x_ref, w1_ref, b1_ref, w2_ref, b2_ref, w3_ref, b3_ref,
                       o_ref):
    """Fused 3-layer MLP: (matmul+bias+relu) x2 then matmul+bias."""
    # Layer 1: Linear -> ReLU
    h1 = jnp.dot(x_ref[...], w1_ref[...], preferred_element_type=jnp.float32)
    h1 = jnp.maximum(h1 + b1_ref[...], 0.0)

    # Layer 2: Linear -> ReLU
    h2 = jnp.dot(h1, w2_ref[...], preferred_element_type=jnp.float32)
    h2 = jnp.maximum(h2 + b2_ref[...], 0.0)

    # Layer 3: Linear (no activation in TD3_Actor2)
    h3 = jnp.dot(h2, w3_ref[...], preferred_element_type=jnp.float32)
    o_ref[...] = (h3 + b3_ref[...]).astype(o_ref.dtype)


@functools.partial(jax.jit, static_argnames=("batch_tile",))
def td3_actor2_forward(state, w1, b1, w2, b2, w3, b3, *, batch_tile=512):
    """Run the fused actor MLP.

    state: (B, input_size) float32
    w_i:   (in_features_i, out_features_i) float32  (transposed vs. PyTorch)
    b_i:   (1, out_features_i) float32
    returns (B, output_size) float32
    """
    B, in_size = state.shape
    h1_size = w1.shape[1]
    h2_size = w2.shape[1]
    out_size = w3.shape[1]

    # Lane-dense output: pad final layer width to a multiple of 128 with zero
    # columns so the output store is an unmasked vst; sliced off afterwards.
    out_pad = _round_up(out_size, _LANE)
    if out_pad != out_size:
        w3 = jnp.pad(w3, ((0, 0), (0, out_pad - out_size)))
        b3 = jnp.pad(b3, ((0, 0), (0, out_pad - out_size)))

    # Batch tile: multiple of 8 sublanes, capped at `batch_tile` rows.  The
    # batch is zero-padded to a whole number of tiles; the grid streams
    # state/output tiles while weights/biases stay resident in VMEM.
    tb = min(_round_up(B, _SUBLANE), _round_up(batch_tile, _SUBLANE))
    b_pad = _round_up(B, tb)
    if b_pad != B:
        state = jnp.pad(state, ((0, b_pad - B), (0, 0)))

    grid = (b_pad // tb,)

    # Weights/biases: full-array blocks, constant block index -> loaded once,
    # VMEM-resident across all batch tiles.
    const = lambda a: pl.BlockSpec(a.shape, lambda i: (0,) * a.ndim)

    flops = 2 * b_pad * (in_size * h1_size + h1_size * h2_size
                         + h2_size * out_pad)
    bytes_accessed = 4 * (b_pad * in_size
                          + in_size * h1_size + h1_size
                          + h1_size * h2_size + h2_size
                          + h2_size * out_pad + out_pad
                          + b_pad * out_pad)

    out = pl.pallas_call(
        _td3_actor2_kernel,
        out_shape=jax.ShapeDtypeStruct((b_pad, out_pad), jnp.float32),
        grid=grid,
        in_specs=[
            pl.BlockSpec((tb, in_size), lambda i: (i, 0)),  # streamed state
            const(w1), const(b1), const(w2), const(b2), const(w3), const(b3),
        ],
        out_specs=pl.BlockSpec((tb, out_pad), lambda i: (i, 0)),
        compiler_params=pltpu.CompilerParams(
            dimension_semantics=("parallel",)),
        cost_estimate=pl.CostEstimate(
            flops=flops, transcendentals=0, bytes_accessed=bytes_accessed),
    )(state, w1, b1, w2, b2, w3, b3)

    return out[:B, :out_size]


def init_linear_params(key, in_features, out_features):
    """Deterministic init matching nn.Linear's default U(-1/sqrt(fan_in), ...)."""
    kw, kb = jax.random.split(key)
    bound = 1.0 / jnp.sqrt(jnp.float32(in_features))
    # Stored as (in, out): transpose of PyTorch's (out, in) weight.
    w = jax.random.uniform(kw, (in_features, out_features), jnp.float32,
                           minval=-bound, maxval=bound)
    b = jax.random.uniform(kb, (1, out_features), jnp.float32,
                           minval=-bound, maxval=bound)
    return w, b


def reference_forward(state, w1, b1, w2, b2, w3, b3):
    """Plain-JAX reference for correctness checking (no output activation)."""
    h = jnp.maximum(state @ w1 + b1, 0.0)
    h = jnp.maximum(h @ w2 + b2, 0.0)
    return h @ w3 + b3


if __name__ == "__main__":
    # Small shapes consistent with the module:
    #   input_size=16, hidden_size1=32, hidden_size2=32, output_size=8
    input_size, hidden1, hidden2, output_size = 16, 32, 32, 8

    key = jax.random.PRNGKey(0)
    k_x, k_x2, k1, k2, k3 = jax.random.split(key, 5)

    w1, b1 = init_linear_params(k1, input_size, hidden1)
    w2, b2 = init_linear_params(k2, hidden1, hidden2)
    w3, b3 = init_linear_params(k3, hidden2, output_size)

    # Case 1: tiny batch (pads batch 4 -> 8, output 8 -> 128 internally).
    state_small = jax.random.normal(k_x, (4, input_size), jnp.float32)
    out_small = jax.block_until_ready(
        td3_actor2_forward(state_small, w1, b1, w2, b2, w3, b3))
    ref_small = reference_forward(state_small, w1, b1, w2, b2, w3, b3)
    assert out_small.shape == (4, output_size)
    assert jnp.allclose(out_small, ref_small, atol=1e-5, rtol=1e-5), \
        "small-batch mismatch vs reference"

    # Case 2: larger batch exercising the batch grid (2 tiles of 256 rows,
    # with batch padding 300 -> 512).
    state_big = jax.random.normal(k_x2, (300, input_size), jnp.float32)
    out_big = jax.block_until_ready(
        td3_actor2_forward(state_big, w1, b1, w2, b2, w3, b3, batch_tile=256))
    ref_big = reference_forward(state_big, w1, b1, w2, b2, w3, b3)
    assert out_big.shape == (300, output_size)
    assert jnp.allclose(out_big, ref_big, atol=1e-5, rtol=1e-5), \
        "large-batch mismatch vs reference"

    print("KERNEL_OK")
</pallas_src>

<mosaic_0001>
module attributes {stable_mosaic.version = 11 : i64} {
  func.func @_td3_actor2_kernel(%arg0: i32, %arg1: memref<8x16xf32, #tpu.memory_space<vmem>>, %arg2: memref<16x32xf32, #tpu.memory_space<vmem>>, %arg3: memref<1x32xf32, #tpu.memory_space<vmem>>, %arg4: memref<32x32xf32, #tpu.memory_space<vmem>>, %arg5: memref<1x32xf32, #tpu.memory_space<vmem>>, %arg6: memref<32x128xf32, #tpu.memory_space<vmem>>, %arg7: memref<1x128xf32, #tpu.memory_space<vmem>>, %arg8: memref<8x128xf32, #tpu.memory_space<vmem>>) attributes {dimension_semantics = [#tpu.dimension_semantics<parallel>], iteration_bounds = array<i64: 1>, scalar_prefetch = 0 : i64, scratch_operands = 0 : i64, tpu.core_type = #tpu.core_type<tc>, window_params = [{transform_indices = @transform_0, window_bounds = array<i64: 8, 16>}, {pipeline_mode = #tpu.pipeline_mode<synchronous>, transform_indices = @transform_1, window_bounds = array<i64: 16, 32>}, {pipeline_mode = #tpu.pipeline_mode<synchronous>, transform_indices = @transform_2, window_bounds = array<i64: 1, 32>}, {pipeline_mode = #tpu.pipeline_mode<synchronous>, transform_indices = @transform_3, window_bounds = array<i64: 32, 32>}, {pipeline_mode = #tpu.pipeline_mode<synchronous>, transform_indices = @transform_4, window_bounds = array<i64: 1, 32>}, {pipeline_mode = #tpu.pipeline_mode<synchronous>, transform_indices = @transform_5, window_bounds = array<i64: 32, 128>}, {pipeline_mode = #tpu.pipeline_mode<synchronous>, transform_indices = @transform_6, window_bounds = array<i64: 1, 128>}, {transform_indices = @transform_7, window_bounds = array<i64: 8, 128>}]} {
    %c0 = arith.constant 0 : index
    %c0_0 = arith.constant 0 : index
    %0 = vector.load %arg1[%c0, %c0_0] : memref<8x16xf32, #tpu.memory_space<vmem>>, vector<8x16xf32>
    %c0_1 = arith.constant 0 : index
    %c0_2 = arith.constant 0 : index
    %1 = vector.load %arg2[%c0_1, %c0_2] : memref<16x32xf32, #tpu.memory_space<vmem>>, vector<16x32xf32>
    %cst = arith.constant dense<0.000000e+00> : vector<8x32xf32>
    %2 = tpu.matmul %0, %1, %cst {dimension_numbers = #tpu.dot_dimension_numbers<[1], [0], [0], [1], [0, 0, 1, 1], [], []>} : vector<8x16xf32>, vector<16x32xf32>, vector<8x32xf32> -> vector<8x32xf32>
    %c0_3 = arith.constant 0 : index
    %c0_4 = arith.constant 0 : index
    %3 = vector.load %arg3[%c0_3, %c0_4] : memref<1x32xf32, #tpu.memory_space<vmem>>, vector<1x32xf32>
    %4 = vector.broadcast %3 : vector<1x32xf32> to vector<8x32xf32>
    %5 = arith.addf %2, %4 : vector<8x32xf32>
    %cst_5 = arith.constant 0.000000e+00 : f32
    %6 = vector.broadcast %cst_5 : f32 to vector<8x32xf32>
    %7 = arith.maximumf %5, %6 : vector<8x32xf32>
    %c0_6 = arith.constant 0 : index
    %c0_7 = arith.constant 0 : index
    %8 = vector.load %arg4[%c0_6, %c0_7] : memref<32x32xf32, #tpu.memory_space<vmem>>, vector<32x32xf32>
    %cst_8 = arith.constant dense<0.000000e+00> : vector<8x32xf32>
    %9 = tpu.matmul %7, %8, %cst_8 {dimension_numbers = #tpu.dot_dimension_numbers<[1], [0], [0], [1], [0, 0, 1, 1], [], []>} : vector<8x32xf32>, vector<32x32xf32>, vector<8x32xf32> -> vector<8x32xf32>
    %c0_9 = arith.constant 0 : index
    %c0_10 = arith.constant 0 : index
    %10 = vector.load %arg5[%c0_9, %c0_10] : memref<1x32xf32, #tpu.memory_space<vmem>>, vector<1x32xf32>
    %11 = vector.broadcast %10 : vector<1x32xf32> to vector<8x32xf32>
    %12 = arith.addf %9, %11 : vector<8x32xf32>
    %cst_11 = arith.constant 0.000000e+00 : f32
    %13 = vector.broadcast %cst_11 : f32 to vector<8x32xf32>
    %14 = arith.maximumf %12, %13 : vector<8x32xf32>
    %c0_12 = arith.constant 0 : index
    %c0_13 = arith.constant 0 : index
    %15 = vector.load %arg6[%c0_12, %c0_13] : memref<32x128xf32, #tpu.memory_space<vmem>>, vector<32x128xf32>
    %cst_14 = arith.constant dense<0.000000e+00> : vector<8x128xf32>
    %16 = tpu.matmul %14, %15, %cst_14 {dimension_numbers = #tpu.dot_dimension_numbers<[1], [0], [0], [1], [0, 0, 1, 1], [], []>} : vector<8x32xf32>, vector<32x128xf32>, vector<8x128xf32> -> vector<8x128xf32>
    %c0_15 = arith.constant 0 : index
    %c0_16 = arith.constant 0 : index
    %17 = vector.load %arg7[%c0_15, %c0_16] : memref<1x128xf32, #tpu.memory_space<vmem>>, vector<1x128xf32>
    %18 = vector.broadcast %17 : vector<1x128xf32> to vector<8x128xf32>
    %19 = arith.addf %16, %18 : vector<8x128xf32>
    %c0_17 = arith.constant 0 : index
    %c0_18 = arith.constant 0 : index
    %20 = vector.load %arg8[%c0_17, %c0_18] : memref<8x128xf32, #tpu.memory_space<vmem>>, vector<8x128xf32>
    tpu.vector_store %arg8[%c0_17, %c0_18], %19 {strides = array<i32>} : memref<8x128xf32, #tpu.memory_space<vmem>>, vector<8x128xf32>,
    return
  }
  func.func @transform_0(%arg0: i32) -> (i32, i32) {
    %c0_i32 = arith.constant 0 : i32
    %c0_i32_0 = arith.constant 0 : i32
    return %arg0, %c0_i32 : i32, i32
  }
  func.func @transform_1(%arg0: i32) -> (i32, i32) {
    %c0_i32 = arith.constant 0 : i32
    %c0_i32_0 = arith.constant 0 : i32
    %c0_i32_1 = arith.constant 0 : i32
    return %c0_i32, %c0_i32_0 : i32, i32
  }
  func.func @transform_2(%arg0: i32) -> (i32, i32) {
    %c0_i32 = arith.constant 0 : i32
    %c0_i32_0 = arith.constant 0 : i32
    %c0_i32_1 = arith.constant 0 : i32
    return %c0_i32, %c0_i32_0 : i32, i32
  }
  func.func @transform_3(%arg0: i32) -> (i32, i32) {
    %c0_i32 = arith.constant 0 : i32
    %c0_i32_0 = arith.constant 0 : i32
    %c0_i32_1 = arith.constant 0 : i32
    return %c0_i32, %c0_i32_0 : i32, i32
  }
  func.func @transform_4(%arg0: i32) -> (i32, i32) {
    %c0_i32 = arith.constant 0 : i32
    %c0_i32_0 = arith.constant 0 : i32
    %c0_i32_1 = arith.constant 0 : i32
    return %c0_i32, %c0_i32_0 : i32, i32
  }
  func.func @transform_5(%arg0: i32) -> (i32, i32) {
    %c0_i32 = arith.constant 0 : i32
    %c0_i32_0 = arith.constant 0 : i32
    %c0_i32_1 = arith.constant 0 : i32
    return %c0_i32, %c0_i32_0 : i32, i32
  }
  func.func @transform_6(%arg0: i32) -> (i32, i32) {
    %c0_i32 = arith.constant 0 : i32
    %c0_i32_0 = arith.constant 0 : i32
    %c0_i32_1 = arith.constant 0 : i32
    return %c0_i32, %c0_i32_0 : i32, i32
  }
  func.func @transform_7(%arg0: i32) -> (i32, i32) {
    %c0_i32 = arith.constant 0 : i32
    %c0_i32_0 = arith.constant 0 : i32
    return %arg0, %c0_i32 : i32, i32
  }
}

</mosaic_0001>

<bundles_post_ra>
// kernel: td3_actor2_forward.1
= control target key start
LH: loop header
LB: loop body
LE: loop exit
PB: predicated region body
PF: predicated region fallthrough
CT: control target
= control target key end

     0   :  { %v336_v0 = vmov 0.0   ;;  %vm337_vm0 = vmmov 0   ;;  %vm36_vm1 = vcmask 130048   ;;  %vm122_vm2 = vcmask 261120   ;;  %s425_s1 = inlined_call_operand.vmem [shape: f32[16,32], index: 1, kind: input, shape index: {}]   ;;  %s426_s0 = inlined_call_operand.vmem [shape: f32[8,16], index: 0, kind: input, shape index: {}]   ;;  %s427_s3 = inlined_call_operand.vmem [shape: f32[32,32], index: 3, kind: input, shape index: {}]   ;;  %s428_s5 = inlined_call_operand.vmem [shape: f32[32,128], index: 5, kind: input, shape index: {}]   ;;  %s429_s2 = inlined_call_operand.vmem [shape: f32[1,32], index: 2, kind: input, shape index: {}]   ;;  %s430_s4 = inlined_call_operand.vmem [shape: f32[1,32], index: 4, kind: input, shape index: {}]   ;;  %s431_s6 = inlined_call_operand.vmem [shape: f32[1,128], index: 6, kind: input, shape index: {}]   ;;  %s432_s7 = inlined_call_operand.vmem [shape: f32[8,128], index: 7, kind: output, shape index: {}]  }
   0x1   :  { %305 = vmatprep.subr.mxu0 %v336_v0  ;;  %v28_v1 = vld [vmem:[%s425_s1 + $0x8] sm:$0xff]  ;;  %v27_v2 = vld [vmem:[%s425_s1] sm:$0xff]  ;;  %309 = vmatprep.mubr.msk.f32.mxu0 %vm337_vm0, %v336_v0  ;;  %v114_v4 = vld [vmem:[%s427_s3 + $0x18] sm:$0xff] }
   0x2   :  { %306 = vmatpush3.msra.mxu0 %v28_v1  ;;  %v26_v3 = vld [vmem:[%s426_s0] sm:$0xff]  ;;  %312 = vmatprep.subr.mxu1 %v336_v0  ;;  %v113_v5 = vld [vmem:[%s427_s3 + $0x10] sm:$0xff]  ;;  %v112_v6 = vld [vmem:[%s427_s3 + $0x8] sm:$0xff] }
   0x3   :  { %307 = vmatprep.subr.mxu0 %v336_v0  ;;  %313 = vmatpush3.msra.mxu1 %v114_v4  ;;  %v111_v7 = vld [vmem:[%s427_s3] sm:$0xff]  ;;  %v200_v8 = vld [vmem:[%s428_s5 + $0x18] sm:$0xff]  ;;  %v199_v14 = vld [vmem:[%s428_s5 + $0x10] sm:$0xff] }
   0x4   :  { %308 = vmatpush3.msra.mxu0 %v27_v2  ;;  %314 = vmatprep.subr.mxu1 %v336_v0  ;;  %v286_v9 = vld [vmem:[%s429_s2] ss:$0 sm:$0xff]  ;;  %v198_v15 = vld [vmem:[%s428_s5 + $0x8] sm:$0xff] }
   0x5   :  { %310 = vmatmul.mubr.msk.f32.vlgmr.msra.gmra.mxu0 %vm36_vm1, %v26_v3  ;;  %320 = vmatprep.mubr.msk.f32.mxu1 %vm337_vm0, %v336_v0  ;;  %v197_v16 = vld [vmem:[%s428_s5] sm:$0xff] }
   0x6   :  { %323 = vmatprep.subr.mxu0 %v336_v0  ;;  %331 = vmatprep.mubr.msk.f32.mxu0 %vm337_vm0, %v336_v0  ;;  %v288_v17 = vld [vmem:[%s430_s4] ss:$0 sm:$0xff] }
   0x7   :  { %315 = vmatpush3.msra.mxu1 %v113_v5  ;;  %324 = vmatpush3.msra.mxu0 %v200_v8  ;;  %v290_v22 = vld [vmem:[%s431_s6] ss:$0 sm:$0xff] }
   0x8   :  { %316 = vmatprep.subr.mxu1 %v336_v0  ;;  %325 = vmatprep.subr.mxu0 %v336_v0 }
   0x9   :  { %317 = vmatpush3.msra.mxu1 %v112_v6  ;;  %326 = vmatpush3.msra.mxu0 %v199_v14 }
   0xa   :  { %318 = vmatprep.subr.mxu1 %v336_v0  ;;  %327 = vmatprep.subr.mxu0 %v336_v0 }
   0xb   :  { %319 = vmatpush3.msra.mxu1 %v111_v7  ;;  %328 = vmatpush3.msra.mxu0 %v198_v15 }
   0xc   :  { %329 = vmatprep.subr.mxu0 %v336_v0 }
   0xd   :  { %330 = vmatpush3.msra.mxu0 %v197_v16 }
  0xc5   :  { %v106_v10 = vpop.f32.mrf.mxu0 }
  0xc6   :  { %v107_v11 = vadd.f32 %v286_v9, %v106_v10 }
  0xc7   :  { %v311_v12 = vpop.f32.mrf.mxu0 }
  0xc8   :  { %v110_v13 = vmax.f32 %v107_v11, 0.0 }
  0xca   :  { %321 = vmatmul.mubr.msk.f32.vlgmr.msra.gmra.mxu1 %vm122_vm2, %v110_v13 }
 0x18a   :  { %v192_v18 = vpop.f32.mrf.mxu1 }
 0x18b   :  { %v193_v19 = vadd.f32 %v288_v17, %v192_v18 }
 0x18c   :  { %v322_v20 = vpop.f32.mrf.mxu1 }
 0x18d   :  { %v196_v21 = vmax.f32 %v193_v19, 0.0 }
 0x18f   :  { %332 = vmatmul.mubr.msk.f32.vlgmr.msra.gmra.mxu0 %vm122_vm2, %v196_v21 }
 0x24f   :  { %v277_v23 = vpop.f32.mrf.mxu0 }
 0x250   :  { %v278_v24 = vadd.f32 %v290_v22, %v277_v23 }
 0x251   :  { %v333_v25 = vpop.f32.mrf.mxu0 }
 0x252   :  { %281 = vst [vmem:[%s432_s7] sm:$0xff] %v278_v24 }

</bundles_post_ra>
